<compile_context>
chip_gen: v7x
topology: tpu7x:2x2x1
jax: 0.10.0
libtpu: 0.0.40
codegen_flags: <defaults>
</compile_context>

<pallas_src>
import jax
import jax.numpy as jnp
from jax import lax
from jax.experimental import pallas as pl
from jax.experimental.pallas import tpu as pltpu


def _frozen_bn_kernel(x_ref, scale_ref, shift_ref, o_ref):
    # x_ref / o_ref: (C, THW) (batch dim squeezed); scale/shift: (C, 1) f32.
    x = x_ref[...].astype(jnp.float32)
    y = x * scale_ref[...] + shift_ref[...]   # broadcast (C,1) over lanes (VPU FMA)
    o_ref[...] = y.astype(o_ref.dtype)


def _choose_tile_hw(hw, c, in_bytes, out_bytes, budget_bytes=8 << 20, max_tile=2048):
    """Largest lane tile (multiple of 128, capped) whose double-buffered
    input+output blocks fit `budget_bytes` of VMEM."""
    per_lane = 2 * c * (in_bytes + out_bytes)          # 2 buffers x (in + out) per lane column
    cap = (budget_bytes // per_lane) // 128 * 128
    cap = max(128, min(int(cap), max_tile))
    if hw <= cap:
        return hw                                      # full spatial extent in one block
    return cap                                         # multiple of 128; ragged tail handled by Pallas


def frozen_batch_norm_2d(x, weight, bias, running_mean, running_var, eps=1e-5):
    """x: (N, C, H, W); params: (C,). Returns (N, C, H, W) with x's dtype."""
    n, c, h, w_dim = x.shape
    hw = h * w_dim
    x2 = x.reshape(n, c, hw)

    # Fold frozen stats into scale/shift once, in f32 (O(C), negligible).
    w_f = weight.astype(jnp.float32)
    b_f = bias.astype(jnp.float32)
    rm_f = running_mean.astype(jnp.float32)
    rv_f = running_var.astype(jnp.float32)
    scale_v = w_f * lax.rsqrt(rv_f + jnp.float32(eps))   # (C,)
    shift_v = b_f - rm_f * scale_v                        # (C,)
    scale = scale_v.reshape(c, 1)
    shift = shift_v.reshape(c, 1)

    itemsize = jnp.dtype(x.dtype).itemsize
    tile_hw = _choose_tile_hw(hw, c, itemsize, itemsize)
    grid = (n, pl.cdiv(hw, tile_hw))

    x_spec = pl.BlockSpec((pl.Squeezed(), c, tile_hw), lambda i, j: (i, 0, j))
    o_spec = pl.BlockSpec((pl.Squeezed(), c, tile_hw), lambda i, j: (i, 0, j))
    p_spec = pl.BlockSpec((c, 1), lambda i, j: (0, 0))

    out = pl.pallas_call(
        _frozen_bn_kernel,
        out_shape=jax.ShapeDtypeStruct((n, c, hw), x.dtype),
        grid_spec=pltpu.PrefetchScalarGridSpec(
            num_scalar_prefetch=0,
            grid=grid,
            in_specs=[x_spec, p_spec, p_spec],
            out_specs=o_spec,
        ),
        compiler_params=pltpu.CompilerParams(
            dimension_semantics=("parallel", "parallel"),
        ),
    )(x2, scale, shift)

    return out.reshape(n, c, h, w_dim)


if __name__ == "__main__":
    key = jax.random.PRNGKey(0)
    kx, kw, kb, km, kv = jax.random.split(key, 5)

    N, C, H, W = 2, 4, 16, 16
    eps = 1e-5

    x = jax.random.normal(kx, (N, C, H, W), dtype=jnp.float32)

    # Deterministic "frozen" buffers (perturbed so the test is non-trivial).
    weight = jnp.ones((C,), jnp.float32) + 0.1 * jax.random.normal(kw, (C,))
    bias = jnp.zeros((C,), jnp.float32) + 0.1 * jax.random.normal(kb, (C,))
    running_mean = 0.1 * jax.random.normal(km, (C,))
    running_var = jnp.ones((C,), jnp.float32) + 0.1 * jnp.abs(
        jax.random.normal(kv, (C,))
    )

    # Reference (pure JAX, mirrors the PyTorch forward exactly).
    w_r = weight.reshape(1, -1, 1, 1)
    b_r = bias.reshape(1, -1, 1, 1)
    rv_r = running_var.reshape(1, -1, 1, 1)
    rm_r = running_mean.reshape(1, -1, 1, 1)
    scale_r = w_r * lax.rsqrt(rv_r + eps)
    shift_r = b_r - rm_r * scale_r
    y_ref = x * scale_r + shift_r

    # f32 activation path.
    y = jax.block_until_ready(
        frozen_batch_norm_2d(x, weight, bias, running_mean, running_var, eps)
    )
    assert y.shape == x.shape and y.dtype == x.dtype
    assert jnp.allclose(y, y_ref, atol=1e-5, rtol=1e-5)

    # bf16 activation path (compute in f32, store bf16).
    x_bf = x.astype(jnp.bfloat16)
    y_bf = jax.block_until_ready(
        frozen_batch_norm_2d(x_bf, weight, bias, running_mean, running_var, eps)
    )
    assert y_bf.shape == x.shape and y_bf.dtype == jnp.bfloat16
    assert jnp.allclose(y_bf.astype(jnp.float32), y_ref, atol=5e-2, rtol=5e-2)

    print("KERNEL_OK")
</pallas_src>

<mosaic_0001>
module attributes {stable_mosaic.version = 11 : i64} {
  func.func @_frozen_bn_kernel(%arg0: i32, %arg1: i32, %arg2: memref<1x4x256xf32, #tpu.memory_space<vmem>>, %arg3: memref<4x1xf32, #tpu.memory_space<vmem>>, %arg4: memref<4x1xf32, #tpu.memory_space<vmem>>, %arg5: memref<1x4x256xf32, #tpu.memory_space<vmem>>) attributes {dimension_semantics = [#tpu.dimension_semantics<parallel>, #tpu.dimension_semantics<parallel>], iteration_bounds = array<i64: 2, 1>, scalar_prefetch = 0 : i64, scratch_operands = 0 : i64, tpu.core_type = #tpu.core_type<tc>, window_params = [{transform_indices = @transform_0, window_bounds = array<i64: 1, 4, 256>}, {pipeline_mode = #tpu.pipeline_mode<synchronous>, transform_indices = @transform_1, window_bounds = array<i64: 4, 1>}, {pipeline_mode = #tpu.pipeline_mode<synchronous>, transform_indices = @transform_2, window_bounds = array<i64: 4, 1>}, {transform_indices = @transform_3, window_bounds = array<i64: 1, 4, 256>}]} {
    %c0 = arith.constant 0 : index
    %c0_0 = arith.constant 0 : index
    %c0_1 = arith.constant 0 : index
    %0 = vector.load %arg2[%c0, %c0_0, %c0_1] : memref<1x4x256xf32, #tpu.memory_space<vmem>>, vector<1x4x256xf32>
    %1 = vector.shape_cast %0 : vector<1x4x256xf32> to vector<4x256xf32>
    %c0_2 = arith.constant 0 : index
    %c0_3 = arith.constant 0 : index
    %2 = vector.load %arg3[%c0_2, %c0_3] : memref<4x1xf32, #tpu.memory_space<vmem>>, vector<4x1xf32>
    %3 = vector.broadcast %2 : vector<4x1xf32> to vector<4x256xf32>
    %4 = arith.mulf %1, %3 : vector<4x256xf32>
    %c0_4 = arith.constant 0 : index
    %c0_5 = arith.constant 0 : index
    %5 = vector.load %arg4[%c0_4, %c0_5] : memref<4x1xf32, #tpu.memory_space<vmem>>, vector<4x1xf32>
    %6 = vector.broadcast %5 : vector<4x1xf32> to vector<4x256xf32>
    %7 = arith.addf %4, %6 : vector<4x256xf32>
    %c0_6 = arith.constant 0 : index
    %c0_7 = arith.constant 0 : index
    %c0_8 = arith.constant 0 : index
    %8 = vector.load %arg5[%c0_6, %c0_7, %c0_8] : memref<1x4x256xf32, #tpu.memory_space<vmem>>, vector<1x4x256xf32>
    %9 = vector.shape_cast %8 : vector<1x4x256xf32> to vector<4x256xf32>
    %10 = vector.shape_cast %7 : vector<4x256xf32> to vector<1x4x256xf32>
    tpu.vector_store %arg5[%c0_6, %c0_7, %c0_8], %10 {strides = array<i32>} : memref<1x4x256xf32, #tpu.memory_space<vmem>>, vector<1x4x256xf32>,
    return
  }
  func.func @transform_0(%arg0: i32, %arg1: i32) -> (i32, i32, i32) {
    %c0_i32 = arith.constant 0 : i32
    %c0_i32_0 = arith.constant 0 : i32
    return %arg0, %c0_i32, %arg1 : i32, i32, i32
  }
  func.func @transform_1(%arg0: i32, %arg1: i32) -> (i32, i32) {
    %c0_i32 = arith.constant 0 : i32
    %c0_i32_0 = arith.constant 0 : i32
    %c0_i32_1 = arith.constant 0 : i32
    return %c0_i32, %c0_i32_0 : i32, i32
  }
  func.func @transform_2(%arg0: i32, %arg1: i32) -> (i32, i32) {
    %c0_i32 = arith.constant 0 : i32
    %c0_i32_0 = arith.constant 0 : i32
    %c0_i32_1 = arith.constant 0 : i32
    return %c0_i32, %c0_i32_0 : i32, i32
  }
  func.func @transform_3(%arg0: i32, %arg1: i32) -> (i32, i32, i32) {
    %c0_i32 = arith.constant 0 : i32
    %c0_i32_0 = arith.constant 0 : i32
    return %arg0, %c0_i32, %arg1 : i32, i32, i32
  }
}

</mosaic_0001>

<bundles_post_ra>
// kernel: tpu_custom_call.1
= control target key start
LH: loop header
LB: loop body
LE: loop exit
PB: predicated region body
PF: predicated region fallthrough
CT: control target
= control target key end

     0   :  { %8 = vsyncpa [#allocation3], 0  ;;  %s736_s0 = inlined_call_operand.hbm [shape: f32[2,4,256], index: 0, kind: input, shape index: {}]   ;;  %s737_s1 = inlined_call_operand.vmem [shape: f32[4,1], index: 1, kind: input, shape index: {}]   ;;  %s738_s2 = inlined_call_operand.vmem [shape: f32[4,1], index: 2, kind: input, shape index: {}]   ;;  %s739_s3 = inlined_call_operand.hbm [shape: f32[2,4,256], index: 3, kind: output, shape index: {}]  }
   0x1   :  { %10 = vsyncpa [#allocation3 + $0x1], 0 }
   0x2   :  { %11 = vsyncpa [#allocation4], 0 }
   0x3   :  { %13 = vsyncpa [#allocation4 + $0x1], 0  ;;  %s558_s12 = smov 0   ;;  %s560_s13 = smov 0  }
   0x4   :  { %s562_s14 = smov 0   ;;  %s564_s15 = smov 0  }
   0x5   :  { %s566_s16 = smov 0   ;;  %s568_s17 = smov 0  }
   0x6 LB: > { %s338_s18 = sadd.s32 4294967295, %s532_s17   ;;  %s339_s19 = sadd.s32 4294967294, %s532_s17   ;;  %s532_s17 = sphi %s568_s17, %s19_s17   ;;  %s528_s16 = sphi %s566_s16, %s755_s16   ;;  %s524_s15 = sphi %s564_s15, %s754_s15   ;;  %s520_s14 = sphi %s562_s14, %s753_s14   ;;  %s516_s13 = sphi %s560_s13, %s752_s13   ;;  %s512_s12 = sphi %s558_s12, %s751_s12  }
   0x7   : > { %s31_s20 = sadd.s32 1, %s528_s16  ;;  %s40_s21 = sadd.s32 1, %s520_s14 }
   0x8   : > { %p33_p0 = scmp.ge.s32.totalorder %s31_s20, 2  ;;  %p47_p1 = scmp.ne.s32.totalorder %s520_s14, %s516_s13 }
   0x9   : > { %p48_p2 = scmp.eq.s32.totalorder %s532_s17, 0  ;;  %p53_p3 = scmp.ne.s32.totalorder %s516_s13, %s512_s12 }
   0xa   : > { %s757_s20 = smov (%p33_p0, %s31_s20), 0  ;;  %p54_p5 = scmp.eq.s32.totalorder %s338_s18, 0 }
   0xb   : > { %p599_p4 = por %p48_p2, %p47_p1  ;;  %s35_s23 = ssub.s32 %s528_s16, %s757_s20 }
   0xc   : > { %p121_p6 = scmp.eq.s32.totalorder %s338_s18, 1  ;;  %p38_p7 = scmp.eq.s32.totalorder %s35_s23, 0 }
   0xd   : > { %p605_p8 = por %p54_p5, %p53_p3  ;;  %p127_p10 = scmp.eq.s32.totalorder %s339_s19, 1 }
   0xe   : > { %p609_p9 = por %p121_p6, %p47_p1  ;;  %p367_p13 = scmp.lt.s32.totalorder %s532_s17, 2 }
   0xf   : > { %s614_s26 = scalar_select %p38_p7, %s520_s14, %s40_s21  }
  0x10   : > { %s743_s25 = scalar_select %p609_p9, 1, 0 }
  0x11   : > { %p616_p11 = por %p127_p10, %p53_p3  ;;  %s153_s28 = sand.u32 1, %s520_s14  }
  0x12   : > { %s342_s29 = sshll.u32 %s153_s28, 3  ;;  %s353_s30 = sshll.u32 %s528_s16, 7 }
  0x13   : > { %s744_s27 = scalar_select %p616_p11, 1, 0 }
  0x14   : > { %s627_s6 = scalar_lea.hbm %s736_s0, %s353_s30  ;;  %s157_s7 = scalar_lea.vmem [#allocation2], %s342_s29 }
  0x15   : > { %s167_s8 = sshll.u32 %s157_s7, 4  ;;  %p633_p0 = pnand %p367_p13, %p599_p4  ;;  %s629_s8 = int_to_ptr.vmem [resolvable:$true] %s167_s8 }
  0x16   : > { %s154_s10 = scalar_lea.sflag [#allocation3], %s153_s28  ;;  %s420_s11 = scalar_lea.hbm %s627_s6, 128 }
  0x17   : > { %p421_p3 = scmp.ne.s32.totalorder %s627_s6, %s420_s11  ;;  %p422_p5 = pneg %p633_p0 }
  0x18   : > { %s425_s21 = scalar_lea.hbm %s736_s0, 256  ;;  %p426_p4 = scmp.lt.u32.totalorder %s627_s6, %s736_s0 }
  0x19   : > { %p423_p6 = pnand %p422_p5, %p421_p3  ;;  %p427_p10 = scmp.lt.u32.totalorder %s425_s21, %s420_s11 }
  0x1a   : > { %p429_p12 = scmp.lt.u32.totalorder %s420_s11, %s627_s6 }
  0x1b   : > { %p424_p7 = pneg %p423_p6  ;;  %p428_p13 = por %p427_p10, %p426_p4 }
  0x1d   : > { %p430_p1 = por %p429_p12, %p428_p13 }
  0x1f   : > { %p431_p2 = pnand %p430_p1, %p424_p7 }
  0x21   : > { %434 = shalt.err (!%p431_p2)
}
  0x22   : > { %s435_s28 = scalar_lea.vmem %s629_s8, 128  ;;  %s534_s29 = smov [#allocation2]  }
  0x23   : > { %p436_p3 = scmp.ne.s32.totalorder %s629_s8, %s435_s28  ;;  %s440_s30 = sshll.u32 %s534_s29, 4  ;;  %s441_s30 = int_to_ptr.vmem [resolvable:$false] %s440_s30 }
  0x24   : > { %s442_s4 = scalar_lea.vmem %s441_s30, 256  ;;  %p443_p9 = scmp.lt.s32.totalorder %s629_s8, %s441_s30 }
  0x25   : > { %p438_p6 = pnand %p436_p3, %p422_p5  ;;  %p444_p4 = scmp.lt.s32.totalorder %s442_s4, %s435_s28 }
  0x27   : > { %p439_p11 = pneg %p438_p6  ;;  %p445_p10 = por %p444_p4, %p443_p9 }
  0x29   : > { %p446_p12 = pnand %p445_p10, %p439_p11 }
  0x2b   : > { %449 = shalt.err (!%p446_p12)
}
  0x2c   : > { %362 = dma.hbm_to_vmem [thread:$0]  (!%p633_p0), %s627_s6, 128, %s629_s8, %s154_s10  }
  0x2d   : > { %p746_p1 = scmp.lt.s32.totalorder %s532_s17, 3  ;;  %p747_p2 = scmp.ge.s32.totalorder %s532_s17, 1 }
  0x2f   : > { %p173_p5 = pnand %p747_p2, %p746_p1 }
  0x30   : > { %s669_s5 = sand.u32 (!%p173_p5), 1, %s516_s13  }
  0x31   : > { %176 = sbr.rel (%p173_p5) target bundleno = 209 (0xd1), region = 32  ;;  %s346_s7 = sshll.u32 (!%p173_p5), %s669_s5, 3 }
  0x32   : > { %s179_s11 = scalar_lea.sflag (!%p173_p5), [#allocation3], %s669_s5  ;;  %s182_s18 = scalar_lea.vmem (!%p173_p5), [#allocation2], %s346_s7 }
  0x38   : > { %503 = dma.done.wait (%p605_p8), %s179_s11, 128  }
  0x39   : > { %505 = vsyncadd (%p605_p8), %s179_s11, 4294967168  ;;  %v535_v0 = vmov 0   ;;  %v208_v1 = vld [vmem:[%s737_s1] sm:$0xf]  ;;  %v536_v3 = vmov 839922192   ;;  %v216_v5 = vlaneseq }
  0x3a   : > { %419 = vset.pattern.permute.xlu0 %v535_v0  ;;  %v222_v2 = vld [vmem:[%s738_s2] sm:$0xf]  ;;  %v214_v4 = vunpack.c.l.s4 %v536_v3  ;;  %s354_s24 = sshll.u32 %s524_s15, 7  ;;  %s204_s19 = scalar_lea.vmem [#allocation5], %s346_s7 }
  0x3b   : > { %211 = vperm.xlu0 %419, %v208_v1   ;;  %v217_v7 = vshrl.u32 %v216_v5, 7  ;;  %v207_v11 = vld [vmem:[%s182_s18] sm:$0xff]  ;;  %s254_s21 = sshll.u32 %s204_s19, 4  ;;  %s687_s28 = scalar_lea.hbm %s739_s3, %s354_s24  ;;  %s689_s21 = int_to_ptr.vmem [resolvable:$true] %s254_s21 }
  0x3c   : > { %v215_v6 = vunpack.c.0.s8 %v214_v4  ;;  %s238_s29 = scalar_lea.sflag [#allocation4], %s669_s5  ;;  %s450_s30 = scalar_lea.vmem %s689_s21, 128 }
  0x3d   : > { %p451_p8 = scmp.ne.s32.totalorder %s689_s21, %s450_s30  ;;  %p748_p9 = scmp.ne.s32.totalorder %s743_s25, 0 }
  0x3e   : > { %v218_v8 = vsub.s32 %v215_v6, %v217_v7  ;;  %s537_s15 = smov [#allocation5]  }
  0x3f   : > { %225 = vperm.xlu0 %419, %v222_v2   ;;  %p452_p11 = pnand %p451_p8, %p748_p9  ;;  %s454_s4 = sshll.u32 %s537_s15, 4  ;;  %s455_s4 = int_to_ptr.vmem [resolvable:$false] %s454_s4 }
  0x40   : > { %s456_s7 = scalar_lea.vmem %s455_s4, 256  ;;  %p457_p7 = scmp.lt.s32.totalorder %s689_s21, %s455_s4 }
  0x41   : > { %p453_p0 = pneg %p452_p11  ;;  %p458_p13 = scmp.lt.s32.totalorder %s456_s7, %s450_s30 }
  0x43   : > { %p459_p3 = por %p458_p13, %p457_p7 }
  0x45   : > { %p460_p6 = pnand %p459_p3, %p453_p0 }
  0xba   : > { %v212_v9 = vpop.permute.xlu0 %211 }
  0xbb   : > { %v219_v10 = vrot.slane %v212_v9, %v218_v8 }
  0xbd   : > { %v221_v13 = vmul.f32 %v219_v10, %v207_v11 }
  0xbe   : > { %v226_v12 = vpop.permute.xlu0 %225 }
  0xbf   : > { %v233_v14 = vrot.slane %v226_v12, %v218_v8 }
  0xc1   : > { %v235_v15 = vadd.f32 %v233_v14, %v221_v13 }
  0xc3   : > { %236 = vst [vmem:[%s204_s19] sm:$0xff] %v235_v15 }
  0xc4   : > { %463 = shalt.err (!%p460_p6)
}
  0xc5   : > { %s464_s5 = scalar_lea.hbm %s687_s28, 128  ;;  %s468_s6 = scalar_lea.hbm %s739_s3, 256 }
  0xc6   : > { %p465_p4 = scmp.ne.s32.totalorder %s687_s28, %s464_s5  ;;  %p469_p1 = scmp.lt.u32.totalorder %s687_s28, %s739_s3 }
  0xc7   : > { %p470_p2 = scmp.lt.u32.totalorder %s468_s6, %s464_s5  ;;  %p472_p8 = scmp.lt.u32.totalorder %s464_s5, %s687_s28 }
  0xc8   : > { %p466_p10 = pnand %p465_p4, %p748_p9 }
  0xc9   : > { %p471_p5 = por %p470_p2, %p469_p1 }
  0xca   : > { %p467_p12 = pneg %p466_p10 }
  0xcb   : > { %p473_p11 = por %p472_p8, %p471_p5 }
  0xcd   : > { %p474_p0 = pnand %p473_p11, %p467_p12 }
  0xcf   : > { %477 = shalt.err (!%p474_p0)
}
  0xd0   : > { %357 = dma.vmem_to_hbm [thread:$0]  (%p748_p9), %s689_s21, 128, %s687_s28, %s238_s29  }
  0xd1 PF: > { %s266_s10 = sand.u32 1, %s512_s12   ;;  %p749_p7 = scmp.ne.s32.totalorder %s744_s27, 0 }
  0xd2   : > { %p750_p13 = scmp.ge.s32.totalorder %s532_s17, 2  ;;  %s267_s24 = scalar_lea.sflag [#allocation4], %s266_s10 }
  0xd4   : > { %p364_p3 = pnand %p750_p13, %p749_p7 }
  0xd6   : > { %507 = dma.done.wait (!%p364_p3), %s267_s24, 128  }
  0xd7   : > { %509 = vsyncadd (!%p364_p3), %s267_s24, 4294967168  ;;  %s19_s17 = sadd.s32 1, %s532_s17   ;;  %s751_s12 = smov %s516_s13 }
  0xd8   : > { %p16_p6 = scmp.ge.s32.totalorder %s19_s17, 4   ;;  %s752_s13 = smov %s520_s14 }
  0xd9   : > { %s753_s14 = smov %s614_s26  ;;  %s754_s15 = smov %s528_s16 }
  0xda   : > { %s755_s16 = smov %s757_s20  ;;  %18 = sbr.rel (!%p16_p6) target bundleno = 6 (0x6), region = 77 }
  0xe1   :  { %272 = vsyncpa [#allocation3], 1 }
  0xe2   :  { %274 = vsyncpa [#allocation3 + $0x1], 1 }
  0xe3   :  { %275 = vsyncpa [#allocation4], 1 }
  0xe4   :  { %277 = vsyncpa [#allocation4 + $0x1], 1 }

</bundles_post_ra>
